<compile_context>
chip_gen: v7x
topology: tpu7x:2x2x1
jax: 0.10.0
libtpu: 0.0.40
codegen_flags: <defaults>
</compile_context>

<pallas_src>
import functools
import math

import jax
import jax.numpy as jnp
import numpy as np
from jax.experimental import pallas as pl
from jax.experimental.pallas import tpu as pltpu

_LANE = 128
_TARGET_BLOCK_BYTES = 2 << 20  # ~2 MiB per (rows, lane) f32 block


# ----------------------------------------------------------------------------
# PE table construction (matches the PyTorch __init__ exactly)
# ----------------------------------------------------------------------------
def build_pe_table(embed: int, pad_size: int) -> jnp.ndarray:
    pos = np.arange(pad_size, dtype=np.float64)[:, None]            # (P, 1)
    i = np.arange(embed, dtype=np.float64)[None, :]                  # (1, E)
    angle = pos / np.power(10000.0, (np.floor(i / 2.0) * 2.0) / embed)
    pe = np.empty((pad_size, embed), dtype=np.float64)
    pe[:, 0::2] = np.sin(angle[:, 0::2])
    pe[:, 1::2] = np.cos(angle[:, 1::2])
    return jnp.asarray(pe, dtype=jnp.float32)


# ----------------------------------------------------------------------------
# Pallas kernels (all blocks are 2D, lane-dense where possible)
# ----------------------------------------------------------------------------
def _pe_add_kernel(x_ref, pe_ref, o_ref):
    # x_ref, pe_ref, o_ref: (tile_rows, lane)
    o_ref[...] = x_ref[...] + pe_ref[...]


def _pe_add_dropout_kernel(x_ref, bits_ref, pe_ref, o_ref, *, inv_keep, threshold):
    # Inverted dropout: keep iff bits < round(keep_prob * 2^32); kept values
    # scaled by 1/keep_prob.  Integer compare only — no shift/convert/mul on bits.
    s = x_ref[...] + pe_ref[...]
    keep = bits_ref[...] < jnp.uint32(threshold)
    o_ref[...] = jnp.where(keep, s * jnp.float32(inv_keep), jnp.float32(0.0))


# ----------------------------------------------------------------------------
# Layout / tiling helpers
# ----------------------------------------------------------------------------
def _lane_dense_layout(x, pe):
    """Flatten x to a 2D (n_rows, lane) view; return matching 2D PE pattern
    whose rows repeat with period `period` along the row axis."""
    B, P, E = x.shape
    if E % _LANE == 0:
        n_rows, lane, period = B * P, E, P
        return x.reshape(n_rows, lane), pe.reshape(P, E), n_rows, lane, period
    if (P * E) % _LANE == 0:
        lane = _LANE
        period = (P * E) // _LANE
        n_rows = (B * P * E) // _LANE
        return (x.reshape(n_rows, lane),
                pe.reshape(period, lane), n_rows, lane, period)
    # Fallback (E not lane-friendly and P*E not a multiple of 128): rows of
    # width E.  Correct, but stores are masked — unavoidable for odd E.
    n_rows, lane, period = B * P, E, P
    return x.reshape(n_rows, lane), pe, n_rows, lane, period


def _choose_row_tile(n_rows, lane, period):
    """Pick a row-tile that (a) is a multiple of the PE period (so one constant
    pre-tiled PE block is correct for every grid step), (b) satisfies the
    (8, 128) sublane constraint, (c) divides n_rows (no partial blocks), and
    (d) targets ~2 MiB per block."""
    unit = (period * 8) // math.gcd(period, 8)   # lcm(period, 8)
    if n_rows <= unit or n_rows % unit != 0:
        return n_rows                            # single full-height block
    target = max(unit, (_TARGET_BLOCK_BYTES // (lane * 4)) // unit * unit)
    tr = min(n_rows, target)
    while n_rows % tr != 0:
        tr -= unit
    return tr


# ----------------------------------------------------------------------------
# Wrapper
# ----------------------------------------------------------------------------
def positional_encoding(x, pe, *, dropout: float = 0.1, train: bool = False,
                        rng_key=None):
    """out = dropout(x + pe).  x: (B, P, E) f32, pe: (P, E) f32."""
    B, P, E = x.shape
    assert pe.shape == (P, E)

    x2, pe2, n_rows, lane, period = _lane_dense_layout(x, pe)
    tr = _choose_row_tile(n_rows, lane, period)
    # tr is always a multiple of `period` (n_rows itself is), so one pre-tiled
    # PE block of height tr is correct at every grid step.
    pe_tile = pe2 if tr == period else jnp.tile(pe2, (tr // period, 1))

    grid = (n_rows // tr,)
    row_spec = pl.BlockSpec((tr, lane), lambda i: (i, 0))
    pe_spec = pl.BlockSpec((tr, lane), lambda i: (0, 0))   # constant block
    out_shape = jax.ShapeDtypeStruct((n_rows, lane), x.dtype)
    cparams = pltpu.CompilerParams(dimension_semantics=("parallel",))

    if train and dropout > 0.0:
        if rng_key is None:
            rng_key = jax.random.PRNGKey(0)
        keep_prob = 1.0 - float(dropout)
        threshold = min((1 << 32) - 1, int(round(keep_prob * float(1 << 32))))
        bits = jax.random.bits(rng_key, (n_rows, lane), dtype=jnp.uint32)
        kernel = functools.partial(_pe_add_dropout_kernel,
                                   inv_keep=1.0 / keep_prob,
                                   threshold=threshold)
        out2 = pl.pallas_call(
            kernel,
            out_shape=out_shape,
            grid=grid,
            in_specs=[row_spec, row_spec, pe_spec],
            out_specs=row_spec,
            compiler_params=cparams,
        )(x2, bits, pe_tile)
    else:
        out2 = pl.pallas_call(
            _pe_add_kernel,
            out_shape=out_shape,
            grid=grid,
            in_specs=[row_spec, pe_spec],
            out_specs=row_spec,
            compiler_params=cparams,
        )(x2, pe_tile)

    return out2.reshape(B, P, E)


# ----------------------------------------------------------------------------
# Demo / correctness check
# ----------------------------------------------------------------------------
if __name__ == "__main__":
    batch, pad_size, embed = 2, 8, 32
    dropout_p = 0.1

    key = jax.random.PRNGKey(0)
    kx, kd = jax.random.split(key)
    x = jax.random.normal(kx, (batch, pad_size, embed), dtype=jnp.float32)
    pe = build_pe_table(embed, pad_size)

    # Eval-mode forward (dropout == identity), matches PyTorch module.eval()
    out = positional_encoding(x, pe, dropout=dropout_p, train=False)
    out = jax.block_until_ready(out)
    ref = np.asarray(x) + np.asarray(pe)[None, :, :]
    np.testing.assert_allclose(np.asarray(out), ref, rtol=1e-6, atol=1e-6)

    # Train-mode forward (inverted dropout via integer-threshold mask).
    out_tr = positional_encoding(x, pe, dropout=dropout_p, train=True,
                                 rng_key=kd)
    out_tr = jax.block_until_ready(out_tr)
    out_tr_np = np.asarray(out_tr)
    ref_scaled = ref * np.float32(1.0 / (1.0 - dropout_p))
    nz = out_tr_np != 0.0
    np.testing.assert_allclose(out_tr_np[nz], ref_scaled[nz],
                               rtol=1e-5, atol=1e-5)

    print("KERNEL_OK")
</pallas_src>

<mosaic_0001>
module attributes {stable_mosaic.version = 11 : i64} {
  func.func @_pe_add_kernel(%arg0: i32, %arg1: memref<4x128xf32, #tpu.memory_space<vmem>>, %arg2: memref<4x128xf32, #tpu.memory_space<vmem>>, %arg3: memref<4x128xf32, #tpu.memory_space<vmem>>) attributes {dimension_semantics = [#tpu.dimension_semantics<parallel>], iteration_bounds = array<i64: 1>, scalar_prefetch = 0 : i64, scratch_operands = 0 : i64, tpu.core_type = #tpu.core_type<tc>, window_params = [{transform_indices = @transform_0, window_bounds = array<i64: 4, 128>}, {pipeline_mode = #tpu.pipeline_mode<synchronous>, transform_indices = @transform_1, window_bounds = array<i64: 4, 128>}, {transform_indices = @transform_2, window_bounds = array<i64: 4, 128>}]} {
    %c0 = arith.constant 0 : index
    %c0_0 = arith.constant 0 : index
    %0 = vector.load %arg1[%c0, %c0_0] : memref<4x128xf32, #tpu.memory_space<vmem>>, vector<4x128xf32>
    %c0_1 = arith.constant 0 : index
    %c0_2 = arith.constant 0 : index
    %1 = vector.load %arg2[%c0_1, %c0_2] : memref<4x128xf32, #tpu.memory_space<vmem>>, vector<4x128xf32>
    %2 = arith.addf %0, %1 : vector<4x128xf32>
    %c0_3 = arith.constant 0 : index
    %c0_4 = arith.constant 0 : index
    %3 = vector.load %arg3[%c0_3, %c0_4] : memref<4x128xf32, #tpu.memory_space<vmem>>, vector<4x128xf32>
    tpu.vector_store %arg3[%c0_3, %c0_4], %2 {strides = array<i32>} : memref<4x128xf32, #tpu.memory_space<vmem>>, vector<4x128xf32>,
    return
  }
  func.func @transform_0(%arg0: i32) -> (i32, i32) {
    %c0_i32 = arith.constant 0 : i32
    %c0_i32_0 = arith.constant 0 : i32
    return %arg0, %c0_i32 : i32, i32
  }
  func.func @transform_1(%arg0: i32) -> (i32, i32) {
    %c0_i32 = arith.constant 0 : i32
    %c0_i32_0 = arith.constant 0 : i32
    %c0_i32_1 = arith.constant 0 : i32
    return %c0_i32, %c0_i32_0 : i32, i32
  }
  func.func @transform_2(%arg0: i32) -> (i32, i32) {
    %c0_i32 = arith.constant 0 : i32
    %c0_i32_0 = arith.constant 0 : i32
    return %arg0, %c0_i32 : i32, i32
  }
}

</mosaic_0001>

<bundles_post_ra>
// kernel: tpu_custom_call.1
= control target key start
LH: loop header
LB: loop body
LE: loop exit
PB: predicated region body
PF: predicated region fallthrough
CT: control target
= control target key end

     0   :  { %7 = vsyncpa [#allocation3], 0  ;;  %s185_s0 = inlined_call_operand.hbm [shape: f32[4,128], index: 0, kind: input, shape index: {}]   ;;  %s186_s1 = inlined_call_operand.hbm [shape: f32[4,128], index: 1, kind: input, shape index: {}]   ;;  %s187_s2 = inlined_call_operand.hbm [shape: f32[4,128], index: 2, kind: output, shape index: {}]  }
   0x1   :  { %8 = vsyncpa [#allocation6], 0 }
   0x2   :  { %9 = vsyncpa [#allocation4], 0  ;;  %s131_s9 = smov [#allocation2]   ;;  %s132_s11 = smov [#allocation5]  }
   0x3   :  { %s16_s10 = sshll.u32 %s131_s9, 4  ;;  %s26_s12 = sshll.u32 %s132_s11, 4  ;;  %s17_s10 = int_to_ptr.vmem [resolvable:$true] %s16_s10  ;;  %s27_s12 = int_to_ptr.vmem [resolvable:$true] %s26_s12 }
   0x4   :  { %s59_s15 = scalar_lea.hbm %s185_s0, 64 }
   0x5   :  { %p60_p0 = scmp.ne.s32.totalorder %s185_s0, %s59_s15  ;;  %p63_p1 = scmp.lt.u32.totalorder %s59_s15, %s185_s0 }
   0x7   :  { %p65_p2 = pnand %p63_p1, %p60_p0 }
   0x9   :  { %68 = shalt.err (!%p65_p2)
}
   0xa   :  { %s69_s20 = scalar_lea.vmem %s17_s10, 64  ;;  %p74_p4 = scmp.lt.s32.totalorder %s17_s10, %s17_s10 }
   0xb   :  { %p70_p3 = scmp.ne.s32.totalorder %s17_s10, %s69_s20  ;;  %p75_p5 = scmp.lt.s32.totalorder %s69_s20, %s69_s20 }
   0xd   :  { %p76_p6 = por %p75_p5, %p74_p4 }
   0xf   :  { %p77_p7 = pnand %p76_p6, %p70_p3 }
  0x11   :  { %80 = shalt.err (!%p77_p7)
}
  0x12   :  { %19 = dma.hbm_to_vmem [thread:$0]  %s185_s0, 64, %s17_s10, [#allocation3]  }
  0x13   :  { %s81_s25 = scalar_lea.hbm %s186_s1, 64 }
  0x14   :  { %p82_p8 = scmp.ne.s32.totalorder %s186_s1, %s81_s25  ;;  %p85_p9 = scmp.lt.u32.totalorder %s81_s25, %s186_s1 }
  0x16   :  { %p87_p10 = pnand %p85_p9, %p82_p8 }
  0x18   :  { %90 = shalt.err (!%p87_p10)
}
  0x19   :  { %s91_s30 = scalar_lea.vmem %s27_s12, 64  ;;  %p96_p12 = scmp.lt.s32.totalorder %s27_s12, %s27_s12 }
  0x1a   :  { %p92_p11 = scmp.ne.s32.totalorder %s27_s12, %s91_s30  ;;  %p97_p13 = scmp.lt.s32.totalorder %s91_s30, %s91_s30 }
  0x1c   :  { %p98_p0 = por %p97_p13, %p96_p12 }
  0x1e   :  { %p99_p1 = pnand %p98_p0, %p92_p11 }
  0x20   :  { %102 = shalt.err (!%p99_p1)
}
  0x21   :  { %29 = dma.hbm_to_vmem [thread:$0]  %s186_s1, 64, %s27_s12, [#allocation6]  }
  0x22   :  { %125 = dma.done.wait [#allocation3], 64  }
  0x23   :  { %126 = vsyncadd [#allocation3], 4294967232 }
  0x24   :  { %127 = dma.done.wait [#allocation6], 64  }
  0x25   :  { %128 = vsyncadd [#allocation6], 4294967232  ;;  %s133_s4 = smov [#allocation7]   ;;  %v36_v0 = vld [vmem:[#allocation2] sm:$0xf] }
  0x26   :  { %s46_s5 = sshll.u32 %s133_s4, 4  ;;  %v37_v1 = vld [vmem:[#allocation5] sm:$0xf]  ;;  %s47_s5 = int_to_ptr.vmem [resolvable:$true] %s46_s5 }
  0x27   :  { %v38_v2 = vadd.f32 %v37_v1, %v36_v0  ;;  %s103_s6 = scalar_lea.vmem %s47_s5, 64  ;;  %p108_p3 = scmp.lt.s32.totalorder %s47_s5, %s47_s5 }
  0x28   :  { %p104_p2 = scmp.ne.s32.totalorder %s47_s5, %s103_s6  ;;  %p109_p4 = scmp.lt.s32.totalorder %s103_s6, %s103_s6 }
  0x29   :  { %39 = vst [vmem:[#allocation7] sm:$0xf] %v38_v2 }
  0x2a   :  { %p110_p5 = por %p109_p4, %p108_p3 }
  0x2c   :  { %p111_p6 = pnand %p110_p5, %p104_p2 }
  0x2e   :  { %114 = shalt.err (!%p111_p6)
}
  0x2f   :  { %s115_s8 = scalar_lea.hbm %s187_s2, 64 }
  0x30   :  { %p116_p7 = scmp.ne.s32.totalorder %s187_s2, %s115_s8  ;;  %p119_p8 = scmp.lt.u32.totalorder %s115_s8, %s187_s2 }
  0x32   :  { %p121_p9 = pnand %p119_p8, %p116_p7 }
  0x34   :  { %124 = shalt.err (!%p121_p9)
}
  0x35   :  { %49 = dma.vmem_to_hbm [thread:$0]  %s47_s5, 64, %s187_s2, [#allocation4]  }
  0x36   :  { %129 = dma.done.wait [#allocation4], 64  }
  0x37   :  { %130 = vsyncadd [#allocation4], 4294967232 }
  0x38   :  { %53 = vsyncpa [#allocation3], 1 }
  0x39   :  { %54 = vsyncpa [#allocation6], 1 }
  0x3a   :  { %55 = vsyncpa [#allocation4], 1 }

</bundles_post_ra>
